<compile_context>
chip_gen: v7x
topology: tpu7x:2x2x1
jax: 0.10.0
libtpu: 0.0.40
codegen_flags: <defaults>
</compile_context>

<pallas_src>
import functools

import jax
import jax.numpy as jnp
from jax.experimental import pallas as pl
from jax.experimental.pallas import tpu as pltpu


def gate_kernel(x_ref, w_ref, weights_ref, indices_ref, *,
                topk, route_scale, score_func):
    x = x_ref[...]                      # [tm, D], native dtype (bf16/f32)
    w = w_ref[...]                      # [E,  D], native dtype

    # scores_T[e, t] = sum_d w[e, d] * x[t, d]   (MXU, f32 accumulate).
    # Contracting the minor dim of both operands avoids materializing any
    # transpose in the kernel body (same pattern as q @ k.T in attention).
    scores = jax.lax.dot_general(
        w, x,
        dimension_numbers=(((1,), (1,)), ((), ())),
        preferred_element_type=jnp.float32)            # [E, tm] f32

    if score_func == "softmax":
        m = jnp.max(scores, axis=0, keepdims=True)     # [1, tm] (sublane reduce)
        e = jnp.exp(scores - m)                        # [E, tm]
        denom = jnp.sum(e, axis=0, keepdims=True)      # [1, tm]
        # Exact reciprocal (approx=True would also be fine for routing).
        inv_denom = pl.reciprocal(denom, approx=False)
        sel = e                                        # monotone with softmax probs
    else:  # "sigmoid"
        sel = jax.nn.sigmoid(scores)
        inv_denom = None

    n_experts, tm = sel.shape
    row_ids = jax.lax.broadcasted_iota(jnp.int32, (n_experts, tm), 0)

    # Iterative top-k over the expert (sublane) axis; topk is small & static.
    work = sel
    val_rows, idx_rows = [], []
    for _ in range(topk):
        top_val = jnp.max(work, axis=0, keepdims=True)                     # [1, tm]
        is_top = work == top_val
        top_idx = jnp.min(jnp.where(is_top, row_ids, n_experts),
                          axis=0, keepdims=True).astype(jnp.int32)         # [1, tm]
        val_rows.append(top_val)
        idx_rows.append(top_idx)
        work = jnp.where(row_ids == top_idx, -jnp.inf, work)

    vals = jnp.concatenate(val_rows, axis=0)           # [topk, tm]
    idxs = jnp.concatenate(idx_rows, axis=0)           # [topk, tm]

    if score_func == "softmax":
        # Normalize only the selected values (tiny [topk, tm] work).
        weights = vals * inv_denom
    else:
        weights = vals / jnp.sum(vals, axis=0, keepdims=True)

    # Lane-dense stores: last dim is tm (>=128 in realistic configs).
    weights_ref[...] = (weights * route_scale).astype(weights_ref.dtype)
    indices_ref[...] = idxs


def _default_tm(T):
    for cand in (512, 256, 128):
        if T % cand == 0:
            return cand
    return T


def gate_forward(x, weight, *, topk, route_scale=1.0, score_func="softmax",
                 tm=None, vmem_limit_bytes=None):
    """x: [T, D], weight: [E, D] -> (weights [T, topk] x.dtype, indices [T, topk] int32)."""
    T, D = x.shape
    E, D2 = weight.shape
    assert D == D2
    if tm is None:
        tm = _default_tm(T)
    assert T % tm == 0

    if vmem_limit_bytes is None:
        est = (2 * tm * D * x.dtype.itemsize          # double-buffered x tile
               + 2 * E * D * weight.dtype.itemsize    # resident gate weight
               + 6 * E * tm * 4                       # f32 scores / exp / scratch
               + 4 * topk * tm * 8)                   # outputs
        vmem_limit_bytes = min(max(2 * est, 32 << 20), 128 << 20)

    kernel = functools.partial(gate_kernel, topk=topk, route_scale=route_scale,
                               score_func=score_func)

    weights_t, indices_t = pl.pallas_call(
        kernel,
        out_shape=(
            jax.ShapeDtypeStruct((topk, T), x.dtype),    # routing weights (transposed)
            jax.ShapeDtypeStruct((topk, T), jnp.int32),  # expert ids (transposed)
        ),
        grid_spec=pltpu.PrefetchScalarGridSpec(
            num_scalar_prefetch=0,
            grid=(T // tm,),
            in_specs=[
                pl.BlockSpec((tm, D), lambda i: (i, 0)),   # token tile of x
                # Gate weight: constant block index -> DMA'd once, stays resident.
                pl.BlockSpec((E, D), lambda i: (0, 0)),
            ],
            out_specs=[
                pl.BlockSpec((topk, tm), lambda i: (0, i)),
                pl.BlockSpec((topk, tm), lambda i: (0, i)),
            ],
        ),
        compiler_params=pltpu.CompilerParams(
            dimension_semantics=("parallel",),
            vmem_limit_bytes=vmem_limit_bytes,
        ),
    )(x, weight)

    # Kernel emits lane-dense [topk, T]; cheap XLA transpose back to module layout.
    return weights_t.T, indices_t.T


if __name__ == "__main__":
    # Small, forward-consistent config: dim=32, n_routed_experts=16,
    # n_activated_experts (topk) = 4, n_expert_groups = 1, softmax scoring,
    # route_scale = 1.0, bias = None (dim != 7168).
    T, D, E, TOPK = 8, 32, 16, 4

    key = jax.random.PRNGKey(0)
    kx, kw, kx2, kw2 = jax.random.split(key, 4)

    # --- float32 correctness check ------------------------------------------
    x = jax.random.normal(kx, (T, D), dtype=jnp.float32)
    gate_weight = jax.random.normal(kw, (E, D), dtype=jnp.float32) * 0.02

    weights, indices = gate_forward(x, gate_weight, topk=TOPK, route_scale=1.0)
    jax.block_until_ready((weights, indices))

    ref_scores = jax.nn.softmax(x @ gate_weight.T, axis=-1)
    ref_w, ref_i = jax.lax.top_k(ref_scores, TOPK)
    assert weights.shape == (T, TOPK) and indices.shape == (T, TOPK)
    assert jnp.allclose(weights, ref_w, atol=1e-5)
    assert jnp.array_equal(indices, ref_i)

    # --- bf16 (model dtype) smoke run: native-dtype MXU path, larger tile ----
    Tb, Db, Eb, TOPKb, SCALE = 128, 256, 64, 6, 2.5
    xb = jax.random.normal(kx2, (Tb, Db)).astype(jnp.bfloat16)
    wb = (jax.random.normal(kw2, (Eb, Db)) * 0.02).astype(jnp.bfloat16)

    wgt_b, idx_b = gate_forward(xb, wb, topk=TOPKb, route_scale=SCALE)
    jax.block_until_ready((wgt_b, idx_b))
    assert wgt_b.shape == (Tb, TOPKb) and wgt_b.dtype == jnp.bfloat16
    assert idx_b.shape == (Tb, TOPKb) and idx_b.dtype == jnp.int32

    # Tie-robust check: reference softmax probs gathered at the kernel's indices
    # must match the kernel's reported routing weights.
    ref_probs = jax.nn.softmax(
        jax.lax.dot_general(xb, wb, (((1,), (1,)), ((), ())),
                            preferred_element_type=jnp.float32), axis=-1)
    gathered = jnp.take_along_axis(ref_probs, idx_b, axis=1) * SCALE
    assert jnp.allclose(wgt_b.astype(jnp.float32), gathered, atol=2e-2)

    print("KERNEL_OK")
</pallas_src>

<mosaic_0001>
module attributes {stable_mosaic.version = 11 : i64} {
  func.func @gate_kernel(%arg0: i32, %arg1: memref<8x32xf32, #tpu.memory_space<vmem>>, %arg2: memref<16x32xf32, #tpu.memory_space<vmem>>, %arg3: memref<4x8xf32, #tpu.memory_space<vmem>>, %arg4: memref<4x8xi32, #tpu.memory_space<vmem>>) attributes {dimension_semantics = [#tpu.dimension_semantics<parallel>], iteration_bounds = array<i64: 1>, scalar_prefetch = 0 : i64, scratch_operands = 0 : i64, tpu.core_type = #tpu.core_type<tc>, window_params = [{transform_indices = @transform_0, window_bounds = array<i64: 8, 32>}, {pipeline_mode = #tpu.pipeline_mode<synchronous>, transform_indices = @transform_1, window_bounds = array<i64: 16, 32>}, {transform_indices = @transform_2, window_bounds = array<i64: 4, 8>}, {transform_indices = @transform_3, window_bounds = array<i64: 4, 8>}]} {
    %c0 = arith.constant 0 : index
    %c0_0 = arith.constant 0 : index
    %0 = vector.load %arg1[%c0, %c0_0] : memref<8x32xf32, #tpu.memory_space<vmem>>, vector<8x32xf32>
    %c0_1 = arith.constant 0 : index
    %c0_2 = arith.constant 0 : index
    %1 = vector.load %arg2[%c0_1, %c0_2] : memref<16x32xf32, #tpu.memory_space<vmem>>, vector<16x32xf32>
    %cst = arith.constant dense<0.000000e+00> : vector<16x8xf32>
    %2 = tpu.matmul %1, %0, %cst {dimension_numbers = #tpu.dot_dimension_numbers<[1], [1], [0], [0], [0, 0, 1, 0], [], []>} : vector<16x32xf32>, vector<8x32xf32>, vector<16x8xf32> -> vector<16x8xf32>
    %cst_3 = arith.constant dense<0xFF800000> : vector<8xf32>
    %3 = vector.multi_reduction <maximumf>, %2, %cst_3 [0] : vector<16x8xf32> to vector<8xf32>
    %4 = vector.shape_cast %3 : vector<8xf32> to vector<1x8xf32>
    %5 = vector.broadcast %4 : vector<1x8xf32> to vector<16x8xf32>
    %6 = arith.subf %2, %5 : vector<16x8xf32>
    %7 = math.exp %6 : vector<16x8xf32>
    %cst_4 = arith.constant dense<0.000000e+00> : vector<8xf32>
    %8 = vector.multi_reduction <add>, %7, %cst_4 [0] : vector<16x8xf32> to vector<8xf32>
    %9 = vector.shape_cast %8 : vector<8xf32> to vector<1x8xf32>
    %10 = tpu.reciprocal %9 : vector<1x8xf32> -> vector<1x8xf32>
    %11 = tpu.iota {dimensions = array<i32: 0>} : vector<16x8xi32>
    %cst_5 = arith.constant dense<0xFF800000> : vector<8xf32>
    %12 = vector.multi_reduction <maximumf>, %7, %cst_5 [0] : vector<16x8xf32> to vector<8xf32>
    %13 = vector.shape_cast %12 : vector<8xf32> to vector<1x8xf32>
    %14 = vector.broadcast %13 : vector<1x8xf32> to vector<16x8xf32>
    %15 = arith.cmpf oeq, %7, %14 : vector<16x8xf32>
    %c16_i32 = arith.constant 16 : i32
    %16 = vector.broadcast %c16_i32 : i32 to vector<16x8xi32>
    %17 = arith.select %15, %11, %16 : vector<16x8xi1>, vector<16x8xi32>
    %cst_6 = arith.constant dense<2147483647> : vector<8xi32>
    %18 = vector.multi_reduction <minsi>, %17, %cst_6 [0] : vector<16x8xi32> to vector<8xi32>
    %19 = vector.shape_cast %18 : vector<8xi32> to vector<1x8xi32>
    %20 = vector.broadcast %19 : vector<1x8xi32> to vector<16x8xi32>
    %21 = arith.cmpi eq, %11, %20 : vector<16x8xi32>
    %cst_7 = arith.constant 0xFF800000 : f32
    %22 = vector.broadcast %cst_7 : f32 to vector<16x8xf32>
    %23 = arith.select %21, %22, %7 : vector<16x8xi1>, vector<16x8xf32>
    %cst_8 = arith.constant dense<0xFF800000> : vector<8xf32>
    %24 = vector.multi_reduction <maximumf>, %23, %cst_8 [0] : vector<16x8xf32> to vector<8xf32>
    %25 = vector.shape_cast %24 : vector<8xf32> to vector<1x8xf32>
    %26 = vector.broadcast %25 : vector<1x8xf32> to vector<16x8xf32>
    %27 = arith.cmpf oeq, %23, %26 : vector<16x8xf32>
    %c16_i32_9 = arith.constant 16 : i32
    %28 = vector.broadcast %c16_i32_9 : i32 to vector<16x8xi32>
    %29 = arith.select %27, %11, %28 : vector<16x8xi1>, vector<16x8xi32>
    %cst_10 = arith.constant dense<2147483647> : vector<8xi32>
    %30 = vector.multi_reduction <minsi>, %29, %cst_10 [0] : vector<16x8xi32> to vector<8xi32>
    %31 = vector.shape_cast %30 : vector<8xi32> to vector<1x8xi32>
    %32 = vector.broadcast %31 : vector<1x8xi32> to vector<16x8xi32>
    %33 = arith.cmpi eq, %11, %32 : vector<16x8xi32>
    %cst_11 = arith.constant 0xFF800000 : f32
    %34 = vector.broadcast %cst_11 : f32 to vector<16x8xf32>
    %35 = arith.select %33, %34, %23 : vector<16x8xi1>, vector<16x8xf32>
    %cst_12 = arith.constant dense<0xFF800000> : vector<8xf32>
    %36 = vector.multi_reduction <maximumf>, %35, %cst_12 [0] : vector<16x8xf32> to vector<8xf32>
    %37 = vector.shape_cast %36 : vector<8xf32> to vector<1x8xf32>
    %38 = vector.broadcast %37 : vector<1x8xf32> to vector<16x8xf32>
    %39 = arith.cmpf oeq, %35, %38 : vector<16x8xf32>
    %c16_i32_13 = arith.constant 16 : i32
    %40 = vector.broadcast %c16_i32_13 : i32 to vector<16x8xi32>
    %41 = arith.select %39, %11, %40 : vector<16x8xi1>, vector<16x8xi32>
    %cst_14 = arith.constant dense<2147483647> : vector<8xi32>
    %42 = vector.multi_reduction <minsi>, %41, %cst_14 [0] : vector<16x8xi32> to vector<8xi32>
    %43 = vector.shape_cast %42 : vector<8xi32> to vector<1x8xi32>
    %44 = vector.broadcast %43 : vector<1x8xi32> to vector<16x8xi32>
    %45 = arith.cmpi eq, %11, %44 : vector<16x8xi32>
    %cst_15 = arith.constant 0xFF800000 : f32
    %46 = vector.broadcast %cst_15 : f32 to vector<16x8xf32>
    %47 = arith.select %45, %46, %35 : vector<16x8xi1>, vector<16x8xf32>
    %cst_16 = arith.constant dense<0xFF800000> : vector<8xf32>
    %48 = vector.multi_reduction <maximumf>, %47, %cst_16 [0] : vector<16x8xf32> to vector<8xf32>
    %49 = vector.shape_cast %48 : vector<8xf32> to vector<1x8xf32>
    %50 = vector.broadcast %49 : vector<1x8xf32> to vector<16x8xf32>
    %51 = arith.cmpf oeq, %47, %50 : vector<16x8xf32>
    %c16_i32_17 = arith.constant 16 : i32
    %52 = vector.broadcast %c16_i32_17 : i32 to vector<16x8xi32>
    %53 = arith.select %51, %11, %52 : vector<16x8xi1>, vector<16x8xi32>
    %cst_18 = arith.constant dense<2147483647> : vector<8xi32>
    %54 = vector.multi_reduction <minsi>, %53, %cst_18 [0] : vector<16x8xi32> to vector<8xi32>
    %55 = vector.shape_cast %54 : vector<8xi32> to vector<1x8xi32>
    %56 = tpu.concatenate %13, %25, %37, %49 in 0 : vector<1x8xf32>, vector<1x8xf32>, vector<1x8xf32>, vector<1x8xf32> -> vector<4x8xf32>
    %57 = tpu.concatenate %19, %31, %43, %55 in 0 : vector<1x8xi32>, vector<1x8xi32>, vector<1x8xi32>, vector<1x8xi32> -> vector<4x8xi32>
    %58 = vector.broadcast %10 : vector<1x8xf32> to vector<4x8xf32>
    %59 = arith.mulf %56, %58 : vector<4x8xf32>
    %cst_19 = arith.constant 1.000000e+00 : f32
    %60 = vector.broadcast %cst_19 : f32 to vector<4x8xf32>
    %61 = arith.mulf %59, %60 : vector<4x8xf32>
    %c0_20 = arith.constant 0 : index
    %c0_21 = arith.constant 0 : index
    %62 = vector.load %arg3[%c0_20, %c0_21] : memref<4x8xf32, #tpu.memory_space<vmem>>, vector<4x8xf32>
    tpu.vector_store %arg3[%c0_20, %c0_21], %61 {strides = array<i32>} : memref<4x8xf32, #tpu.memory_space<vmem>>, vector<4x8xf32>,
    %c0_22 = arith.constant 0 : index
    %c0_23 = arith.constant 0 : index
    %63 = vector.load %arg4[%c0_22, %c0_23] : memref<4x8xi32, #tpu.memory_space<vmem>>, vector<4x8xi32>
    tpu.vector_store %arg4[%c0_22, %c0_23], %57 {strides = array<i32>} : memref<4x8xi32, #tpu.memory_space<vmem>>, vector<4x8xi32>,
    return
  }
  func.func @transform_0(%arg0: i32) -> (i32, i32) {
    %c0_i32 = arith.constant 0 : i32
    %c0_i32_0 = arith.constant 0 : i32
    return %arg0, %c0_i32 : i32, i32
  }
  func.func @transform_1(%arg0: i32) -> (i32, i32) {
    %c0_i32 = arith.constant 0 : i32
    %c0_i32_0 = arith.constant 0 : i32
    %c0_i32_1 = arith.constant 0 : i32
    return %c0_i32, %c0_i32_0 : i32, i32
  }
  func.func @transform_2(%arg0: i32) -> (i32, i32) {
    %c0_i32 = arith.constant 0 : i32
    %c0_i32_0 = arith.constant 0 : i32
    return %c0_i32, %arg0 : i32, i32
  }
  func.func @transform_3(%arg0: i32) -> (i32, i32) {
    %c0_i32 = arith.constant 0 : i32
    %c0_i32_0 = arith.constant 0 : i32
    return %c0_i32, %arg0 : i32, i32
  }
}

</mosaic_0001>

<bundles_post_ra>
// kernel: tpu_custom_call.1
= control target key start
LH: loop header
LB: loop body
LE: loop exit
PB: predicated region body
PF: predicated region fallthrough
CT: control target
= control target key end

     0   :  { %9 = vsyncpa [#allocation3], 0  ;;  %s568_s0 = inlined_call_operand.hbm [shape: f32[8,32], index: 0, kind: input, shape index: {}]   ;;  %s569_s1 = inlined_call_operand.hbm [shape: f32[16,32], index: 1, kind: input, shape index: {}]   ;;  %s570_s2 = inlined_call_operand.hbm [shape: f32[4,8], index: 2, kind: output, shape index: {0}]   ;;  %s571_s3 = inlined_call_operand.hbm [shape: s32[4,8], index: 3, kind: output, shape index: {1}]  }
   0x1   :  { %10 = vsyncpa [#allocation6], 0 }
   0x2   :  { %11 = vsyncpa [#allocation4], 0 }
   0x3   :  { %12 = vsyncpa [#allocation9], 0  ;;  %s436_s12 = smov [#allocation2]   ;;  %s437_s14 = smov [#allocation5]  }
   0x4   :  { %s19_s13 = sshll.u32 %s436_s12, 4  ;;  %s28_s15 = sshll.u32 %s437_s14, 4  ;;  %s20_s13 = int_to_ptr.vmem [resolvable:$true] %s19_s13  ;;  %s462_s15 = int_to_ptr.vmem [resolvable:$true] %s28_s15 }
   0x5   :  { %s340_s18 = scalar_lea.hbm %s568_s0, 128 }
   0x6   :  { %p341_p0 = scmp.ne.s32.totalorder %s568_s0, %s340_s18  ;;  %p344_p1 = scmp.lt.u32.totalorder %s340_s18, %s568_s0 }
   0x8   :  { %p346_p2 = pnand %p344_p1, %p341_p0 }
   0xa   :  { %349 = shalt.err (!%p346_p2)
}
   0xb   :  { %s350_s23 = scalar_lea.vmem %s20_s13, 128  ;;  %p355_p4 = scmp.lt.s32.totalorder %s20_s13, %s20_s13 }
   0xc   :  { %p351_p3 = scmp.ne.s32.totalorder %s20_s13, %s350_s23  ;;  %p356_p5 = scmp.lt.s32.totalorder %s350_s23, %s350_s23 }
   0xe   :  { %p357_p6 = por %p356_p5, %p355_p4 }
  0x10   :  { %p358_p7 = pnand %p357_p6, %p351_p3 }
  0x12   :  { %361 = shalt.err (!%p358_p7)
}
  0x13   :  { %22 = dma.hbm_to_vmem [thread:$0]  %s568_s0, 128, %s20_s13, [#allocation3]  }
  0x14   :  { %s362_s28 = scalar_lea.hbm %s569_s1, 256 }
  0x15   :  { %p363_p8 = scmp.ne.s32.totalorder %s569_s1, %s362_s28  ;;  %p366_p9 = scmp.lt.u32.totalorder %s362_s28, %s569_s1 }
  0x17   :  { %p368_p10 = pnand %p366_p9, %p363_p8 }
  0x19   :  { %371 = shalt.err (!%p368_p10)
}
  0x1a   :  { %s372_s6 = scalar_lea.vmem %s462_s15, 256  ;;  %p377_p12 = scmp.lt.s32.totalorder %s462_s15, %s462_s15 }
  0x1b   :  { %p373_p11 = scmp.ne.s32.totalorder %s462_s15, %s372_s6  ;;  %p378_p13 = scmp.lt.s32.totalorder %s372_s6, %s372_s6 }
  0x1d   :  { %p379_p0 = por %p378_p13, %p377_p12 }
  0x1f   :  { %p380_p1 = pnand %p379_p0, %p373_p11 }
  0x21   :  { %383 = shalt.err (!%p380_p1)
}
  0x22   :  { %s438_s0 = smov 128   ;;  %s439_s7 = smov 8  }
  0x23   :  { %34 = dma.hbm_to_vmem [thread:$0]  %s569_s1, 256, %s462_s15, [#allocation6], %s438_s0, %s438_s0, %s439_s7  }
  0x24   :  { %428 = dma.done.wait [#allocation3], 128  }
  0x25   :  { %429 = vsyncadd [#allocation3], 4294967168 }
  0x26   :  { %430 = dma.done.wait [#allocation6], 256  }
  0x27   :  { %431 = vsyncadd [#allocation6], 4294967040  ;;  %vm44_vm0 = vcmask 261120   ;;  %v41_v0 = vld [vmem:[#allocation2] sm:$0xff]  ;;  %v42_v1 = vld [vmem:[#allocation5] sm:$0xff]  ;;  %vm129_vm1 = vcmask 64512   ;;  %v155_v27 = vlaneseq }
  0x28   :  { %323 = vmatprep.subr.msk.mxu0 %vm44_vm0, %v41_v0  ;;  %325 = vmatprep.mubr.msk.f32.mxu0 %vm44_vm0, %v42_v1  ;;  %v43_v2 = vld [vmem:[#allocation5 + $0x8] sm:$0xff]  ;;  %vm274_vm10 = vcmask 1040384   ;;  %s440_s1 = smov [#allocation7]  }
  0x29   :  { %324 = vmatpush3.xpose.msk.msra.mxu0 %vm44_vm0, %v41_v0  ;;  %v501_v30 = vshrl.u32 %v155_v27, 7  ;;  %s293_s10 = sshll.u32 %s440_s1, 4  ;;  %s294_s10 = int_to_ptr.vmem [resolvable:$true] %s293_s10 }
  0x2a   :  { %s384_s11 = scalar_lea.vmem %s294_s10, 64  ;;  %p389_p3 = scmp.lt.s32.totalorder %s294_s10, %s294_s10 }
  0x2b   :  { %v504_v33 = vadd.s32 8, %v501_v30  ;;  %p385_p2 = scmp.ne.s32.totalorder %s294_s10, %s384_s11  ;;  %p390_p4 = scmp.lt.s32.totalorder %s384_s11, %s384_s11 }
  0x2c   :  { %326 = vmatmul.mubr.msk.f32.vlgmr.msra.gmra.mrb[0].mxu0 %vm44_vm0, %v43_v2 }
  0x2d   :  { %p391_p5 = por %p390_p4, %p389_p3 }
  0x2f   :  { %p392_p6 = pnand %p391_p5, %p385_p2 }
  0xff   :  { %v327_v3 = vpop.f32.mrb[0].mxu0 }
 0x100   :  { %v131_v4 = vsel %vm129_vm1, %v327_v3, -inf  ;;  %v120_v5 = vpop.f32.mrb[1].mxu0 }
 0x101   :  { %v130_v6 = vsel %vm129_vm1, %v120_v5, -inf }
 0x102   :  { %v132_v7 = vmax.f32 %v130_v6, %v131_v4 }
 0x104   :  { %v133_v8 = vrot.slane %v132_v7, 4 }
 0x106   :  { %v134_v9 = vmax.f32 %v132_v7, %v133_v8 }
 0x108   :  { %v135_v10 = vrot.slane %v134_v9, 2 }
 0x10a   :  { %v136_v11 = vmax.f32 %v134_v9, %v135_v10 }
 0x10c   :  { %v137_v12 = vrot.slane %v136_v11, 1 }
 0x10e   :  { %v138_v13 = vmax.f32 %v136_v11, %v137_v12 }
 0x110   :  { %v139_v14 = vsub.f32 %v120_v5, %v138_v13  ;;  %v140_v15 = vsub.f32 %v327_v3, %v138_v13 }
 0x112   :  { %v141_v16 = vmul.f32 1.442695, %v139_v14  ;;  %v143_v17 = vmul.f32 1.442695, %v140_v15 }
 0x114   :  { %334 = vpow2.f32 %v141_v16 }
 0x115   :  { %336 = vpow2.f32 %v143_v17 }
 0x11e   :  { %v335_v18 = vpop.eup %334 }
 0x11f   :  { %v337_v19 = vpop.eup %336  ;;  %v145_v20 = vsel %vm129_vm1, %v335_v18, 0.0  ;;  %v158_v21 = vsel %vm129_vm1, %v335_v18, -inf }
 0x120   :  { %v146_v22 = vsel %vm129_vm1, %v337_v19, 0.0  ;;  %v159_v23 = vsel %vm129_vm1, %v337_v19, -inf }
 0x121   :  { %v499_v24 = vadd.f32 %v146_v22, %v145_v20  ;;  %v160_v25 = vmax.f32 %v158_v21, %v159_v23 }
 0x123   :  { %v161_v26 = vrot.slane %v160_v25, 4  ;;  %v148_v17 = vrot.slane %v499_v24, 4 }
 0x125   :  { %v162_v28 = vmax.f32 %v160_v25, %v161_v26  ;;  %v149_v23 = vadd.f32 %v148_v17, %v499_v24 }
 0x127   :  { %v163_v29 = vrot.slane %v162_v28, 2  ;;  %v150_v27 = vrot.slane %v149_v23, 2 }
 0x129   :  { %v164_v31 = vmax.f32 %v162_v28, %v163_v29 }
 0x12b   :  { %v165_v32 = vrot.slane %v164_v31, 1 }
 0x12d   :  { %v166_v34 = vmax.f32 %v164_v31, %v165_v32  ;;  %v151_v31 = vadd.f32 %v150_v27, %v149_v23 }
 0x12f   :  { %vm167_vm2 = vcmp.eq.f32.partialorder %v335_v18, %v166_v34  ;;  %vm168_vm3 = vcmp.eq.f32.partialorder %v337_v19, %v166_v34 }
 0x130   :  { %v169_v35 = vsel %vm167_vm2, %v501_v30, 16  ;;  %v170_v36 = vsel %vm168_vm3, %v504_v33, 16 }
 0x131   :  { %v171_v37 = vsel %vm129_vm1, %v169_v35, 2147483647  ;;  %v172_v38 = vsel %vm129_vm1, %v170_v36, 2147483647  ;;  %v152_v35 = vrot.slane %v151_v31, 1 }
 0x132   :  { %vm173_vm4 = vcmp.lt.s32.totalorder %v171_v37, %v172_v38 }
 0x133   :  { %v174_v39 = vsel %vm173_vm4, %v171_v37, %v172_v38  ;;  %vm276_vm4 = vcmask 1041408  }
 0x134   :  { %v175_v40 = vrot.slane %v174_v39, 4 }
 0x136   :  { %vm176_vm5 = vcmp.lt.s32.totalorder %v174_v39, %v175_v40 }
 0x137   :  { %v177_v41 = vsel %vm176_vm5, %v174_v39, %v175_v40 }
 0x138   :  { %v178_v42 = vrot.slane %v177_v41, 2 }
 0x13a   :  { %vm179_vm6 = vcmp.lt.s32.totalorder %v177_v41, %v178_v42 }
 0x13b   :  { %v180_v43 = vsel %vm179_vm6, %v177_v41, %v178_v42  ;;  %v153_v41 = vadd.f32 %v152_v35, %v151_v31 }
 0x13c   :  { %v181_v44 = vrot.slane %v180_v43, 1 }
 0x13d   :  { %338 = vrcp.f32 %v153_v41 }
 0x13e   :  { %vm182_vm7 = vcmp.lt.s32.totalorder %v180_v43, %v181_v44 }
 0x13f   :  { %v183_v45 = vsel %vm182_vm7, %v180_v43, %v181_v44 }
 0x140   :  { %vm184_vm8 = vcmp.eq.s32.totalorder %v501_v30, %v183_v45  ;;  %vm185_vm9 = vcmp.eq.s32.totalorder %v504_v33, %v183_v45 }
 0x141   :  { %v186_v46 = vsel %vm184_vm8, -inf, %v335_v18  ;;  %v187_v47 = vsel %vm185_vm9, -inf, %v337_v19 }
 0x142   :  { %v188_v48 = vsel %vm129_vm1, %v186_v46, -inf  ;;  %v189_v49 = vsel %vm129_vm1, %v187_v47, -inf }
 0x143   :  { %v190_v50 = vmax.f32 %v188_v48, %v189_v49 }
 0x145   :  { %v191_v51 = vrot.slane %v190_v50, 4 }
 0x147   :  { %v192_v52 = vmax.f32 %v190_v50, %v191_v51  ;;  %v339_v49 = vpop.eup %338 }
 0x149   :  { %v193_v53 = vrot.slane %v192_v52, 2 }
 0x14b   :  { %v194_v54 = vmax.f32 %v192_v52, %v193_v53 }
 0x14d   :  { %v195_v55 = vrot.slane %v194_v54, 1 }
 0x14f   :  { %v196_v56 = vmax.f32 %v194_v54, %v195_v55 }
 0x151   :  { %vm197_vm11 = vcmp.eq.f32.partialorder %v186_v46, %v196_v56  ;;  %vm198_vm12 = vcmp.eq.f32.partialorder %v187_v47, %v196_v56  ;;  %v275_v57 = vsel %vm274_vm10, %v166_v34, %v196_v56 }
 0x152   :  { %v199_v58 = vsel %vm197_vm11, %v501_v30, 16  ;;  %v200_v59 = vsel %vm198_vm12, %v504_v33, 16 }
 0x153   :  { %v201_v60 = vsel %vm129_vm1, %v199_v58, 2147483647  ;;  %v202_v61 = vsel %vm129_vm1, %v200_v59, 2147483647 }
 0x154   :  { %vm203_vm13 = vcmp.lt.s32.totalorder %v201_v60, %v202_v61 }
 0x155   :  { %v204_v62 = vsel %vm203_vm13, %v201_v60, %v202_v61  ;;  %vm278_vm13 = vcmask 1042432  }
 0x156   :  { %v205_v63 = vrot.slane %v204_v62, 4 }
 0x158   :  { %vm206_vm14 = vcmp.lt.s32.totalorder %v204_v62, %v205_v63 }
 0x159   :  { %v207_v0 = vsel %vm206_vm14, %v204_v62, %v205_v63 }
 0x15a   :  { %v208_v1 = vrot.slane %v207_v0, 2 }
 0x15c   :  { %vm209_vm15 = vcmp.lt.s32.totalorder %v207_v0, %v208_v1 }
 0x15d   :  { %v210_v2 = vsel %vm209_vm15, %v207_v0, %v208_v1 }
 0x15e   :  { %v211_v3 = vrot.slane %v210_v2, 1 }
 0x160   :  { %vm212_vm0 = vcmp.lt.s32.totalorder %v210_v2, %v211_v3 }
 0x161   :  { %v213_v4 = vsel %vm212_vm0, %v210_v2, %v211_v3  ;;  %vm284_vm0 = vcmask 60416  }
 0x162   :  { %vm214_vm2 = vcmp.eq.s32.totalorder %v501_v30, %v213_v4  ;;  %vm215_vm3 = vcmp.eq.s32.totalorder %v504_v33, %v213_v4  ;;  %v280_v5 = vsel %vm274_vm10, %v183_v45, %v213_v4 }
 0x163   :  { %v216_v6 = vsel %vm214_vm2, -inf, %v186_v46  ;;  %v217_v7 = vsel %vm215_vm3, -inf, %v187_v47 }
 0x164   :  { %v218_v8 = vsel %vm129_vm1, %v216_v6, -inf  ;;  %v219_v9 = vsel %vm129_vm1, %v217_v7, -inf }
 0x165   :  { %v220_v10 = vmax.f32 %v218_v8, %v219_v9 }
 0x167   :  { %v221_v11 = vrot.slane %v220_v10, 4 }
 0x169   :  { %v222_v12 = vmax.f32 %v220_v10, %v221_v11 }
 0x16b   :  { %v223_v13 = vrot.slane %v222_v12, 2 }
 0x16d   :  { %v224_v14 = vmax.f32 %v222_v12, %v223_v13 }
 0x16f   :  { %v225_v15 = vrot.slane %v224_v14, 1 }
 0x171   :  { %v226_v16 = vmax.f32 %v224_v14, %v225_v15 }
 0x173   :  { %vm227_vm5 = vcmp.eq.f32.partialorder %v216_v6, %v226_v16  ;;  %vm228_vm6 = vcmp.eq.f32.partialorder %v217_v7, %v226_v16  ;;  %v277_v18 = vsel %vm276_vm4, %v275_v57, %v226_v16 }
 0x174   :  { %v229_v19 = vsel %vm227_vm5, %v501_v30, 16  ;;  %v230_v20 = vsel %vm228_vm6, %v504_v33, 16 }
 0x175   :  { %v231_v21 = vsel %vm129_vm1, %v229_v19, 2147483647  ;;  %v232_v22 = vsel %vm129_vm1, %v230_v20, 2147483647 }
 0x176   :  { %vm233_vm7 = vcmp.lt.s32.totalorder %v231_v21, %v232_v22 }
 0x177   :  { %v234_v25 = vsel %vm233_vm7, %v231_v21, %v232_v22 }
 0x178   :  { %v235_v26 = vrot.slane %v234_v25, 4 }
 0x17a   :  { %vm236_vm8 = vcmp.lt.s32.totalorder %v234_v25, %v235_v26 }
 0x17b   :  { %v237_v28 = vsel %vm236_vm8, %v234_v25, %v235_v26 }
 0x17c   :  { %v238_v29 = vrot.slane %v237_v28, 2 }
 0x17e   :  { %vm239_vm9 = vcmp.lt.s32.totalorder %v237_v28, %v238_v29 }
 0x17f   :  { %v240_v32 = vsel %vm239_vm9, %v237_v28, %v238_v29 }
 0x180   :  { %v241_v34 = vrot.slane %v240_v32, 1 }
 0x182   :  { %vm242_vm10 = vcmp.lt.s32.totalorder %v240_v32, %v241_v34 }
 0x183   :  { %v243_v36 = vsel %vm242_vm10, %v240_v32, %v241_v34 }
 0x184   :  { %vm244_vm11 = vcmp.eq.s32.totalorder %v501_v30, %v243_v36  ;;  %vm245_vm12 = vcmp.eq.s32.totalorder %v504_v33, %v243_v36  ;;  %v281_v37 = vsel %vm276_vm4, %v280_v5, %v243_v36 }
 0x185   :  { %v246_v24 = vsel %vm244_vm11, -inf, %v216_v6  ;;  %v247_v38 = vsel %vm245_vm12, -inf, %v217_v7 }
 0x186   :  { %v248_v39 = vsel %vm129_vm1, %v246_v24, -inf  ;;  %v249_v40 = vsel %vm129_vm1, %v247_v38, -inf }
 0x187   :  { %v250_v42 = vmax.f32 %v248_v39, %v249_v40 }
 0x189   :  { %v251_v43 = vrot.slane %v250_v42, 4 }
 0x18b   :  { %v252_v44 = vmax.f32 %v250_v42, %v251_v43 }
 0x18d   :  { %v253_v45 = vrot.slane %v252_v44, 2 }
 0x18f   :  { %v254_v46 = vmax.f32 %v252_v44, %v253_v45 }
 0x191   :  { %v255_v47 = vrot.slane %v254_v46, 1 }
 0x193   :  { %v256_v48 = vmax.f32 %v254_v46, %v255_v47 }
 0x195   :  { %vm257_vm14 = vcmp.eq.f32.partialorder %v246_v24, %v256_v48  ;;  %vm258_vm15 = vcmp.eq.f32.partialorder %v247_v38, %v256_v48  ;;  %v279_v50 = vsel %vm278_vm13, %v277_v18, %v256_v48 }
 0x196   :  { %v283_v51 = vmul.f32 %v339_v49, %v279_v50  ;;  %v259_v52 = vsel %vm257_vm14, %v501_v30, 16  ;;  %v260_v53 = vsel %vm258_vm15, %v504_v33, 16 }
 0x197   :  { %v261_v54 = vsel %vm129_vm1, %v259_v52, 2147483647  ;;  %v262_v55 = vsel %vm129_vm1, %v260_v53, 2147483647 }
 0x198   :  { %285 = vst.msk [vmem:[#allocation7] sm:$0xf] %vm284_vm0, %v283_v51  ;;  %vm263_vm2 = vcmp.lt.s32.totalorder %v261_v54, %v262_v55 }
 0x199   :  { %395 = shalt.err (!%p392_p6)
}
 0x19a   :  { %s396_s14 = scalar_lea.hbm %s570_s2, 64 }
 0x19b   :  { %p397_p7 = scmp.ne.s32.totalorder %s570_s2, %s396_s14  ;;  %p400_p8 = scmp.lt.u32.totalorder %s396_s14, %s570_s2 }
 0x19d   :  { %p402_p9 = pnand %p400_p8, %p397_p7 }
 0x19f   :  { %405 = shalt.err (!%p402_p9)
}
 0x1a0   :  { %296 = dma.vmem_to_hbm [thread:$0]  %s294_s10, 64, %s570_s2, [#allocation4]   ;;  %v264_v30 = vsel %vm263_vm2, %v261_v54, %v262_v55 }
 0x1a1   :  { %v265_v33 = vrot.slane %v264_v30, 4  ;;  %s441_s21 = smov [#allocation8]  }
 0x1a2   :  { %s303_s22 = sshll.u32 %s441_s21, 4  ;;  %s304_s22 = int_to_ptr.vmem [resolvable:$true] %s303_s22 }
 0x1a3   :  { %vm266_vm1 = vcmp.lt.s32.totalorder %v264_v30, %v265_v33  ;;  %s406_s23 = scalar_lea.vmem %s304_s22, 64  ;;  %p411_p11 = scmp.lt.s32.totalorder %s304_s22, %s304_s22 }
 0x1a4   :  { %v267_v56 = vsel %vm266_vm1, %v264_v30, %v265_v33  ;;  %p407_p10 = scmp.ne.s32.totalorder %s304_s22, %s406_s23  ;;  %p412_p12 = scmp.lt.s32.totalorder %s406_s23, %s406_s23 }
 0x1a5   :  { %v268_v57 = vrot.slane %v267_v56, 2 }
 0x1a6   :  { %p413_p13 = por %p412_p12, %p411_p11 }
 0x1a7   :  { %vm269_vm3 = vcmp.lt.s32.totalorder %v267_v56, %v268_v57 }
 0x1a8   :  { %v270_v58 = vsel %vm269_vm3, %v267_v56, %v268_v57  ;;  %p414_p0 = pnand %p413_p13, %p407_p10 }
 0x1a9   :  { %v271_v59 = vrot.slane %v270_v58, 1 }
 0x1ab   :  { %vm272_vm4 = vcmp.lt.s32.totalorder %v270_v58, %v271_v59 }
 0x1ac   :  { %v273_v60 = vsel %vm272_vm4, %v270_v58, %v271_v59 }
 0x1ad   :  { %v282_v61 = vsel %vm278_vm13, %v281_v37, %v273_v60 }
 0x1ae   :  { %286 = vst.msk [vmem:[#allocation8] sm:$0xf] %vm284_vm0, %v282_v61 }
 0x1af   :  { %417 = shalt.err (!%p414_p0)
}
 0x1b0   :  { %s418_s25 = scalar_lea.hbm %s571_s3, 64 }
 0x1b1   :  { %p419_p1 = scmp.ne.s32.totalorder %s571_s3, %s418_s25  ;;  %p422_p2 = scmp.lt.u32.totalorder %s418_s25, %s571_s3 }
 0x1b3   :  { %p424_p3 = pnand %p422_p2, %p419_p1 }
 0x1b5   :  { %427 = shalt.err (!%p424_p3)
}
 0x1b6   :  { %306 = dma.vmem_to_hbm [thread:$0]  %s304_s22, 64, %s571_s3, [#allocation9]  }
 0x1b7   :  { %432 = dma.done.wait [#allocation4], 64  }
 0x1b8   :  { %433 = vsyncadd [#allocation4], 4294967232 }
 0x1b9   :  { %434 = dma.done.wait [#allocation9], 64  }
 0x1ba   :  { %435 = vsyncadd [#allocation9], 4294967232 }
 0x1bb   :  { %313 = vsyncpa [#allocation3], 1 }
 0x1bc   :  { %314 = vsyncpa [#allocation6], 1 }
 0x1bd   :  { %315 = vsyncpa [#allocation4], 1 }
 0x1be   :  { %316 = vsyncpa [#allocation9], 1 }

</bundles_post_ra>
